<compile_context>
chip_gen: v5e
topology: v5e:2x2
jax: 0.10.0
libtpu: 0.0.40
codegen_flags: <defaults>
</compile_context>

<pallas_src>
import functools
import math

import jax
import jax.numpy as jnp
from jax.experimental import pallas as pl
from jax.experimental.pallas import tpu as pltpu


def _hgcn_kernel(h_ref, w_ref, u_ref, f_ref, im_ref, *, compute_dtype):
    # h_ref : (Bt, N, D1)   Bt batch elements
    # w_ref : (D1, Ep)      shared weight W   (E zero-padded to Ep)
    # u_ref : (Ep, Ep)      shared weight U   (zero-padded)
    # f_ref : (Bt, N, D1)   output node_emb_F
    # im_ref: (Bt, N, E)    output incidence_matrix (true, unpadded width)
    bt, n, d1 = h_ref.shape
    ep = w_ref.shape[1]
    e_out = im_ref.shape[-1]

    h = h_ref[...].astype(compute_dtype)           # (Bt, N, D1)
    w = w_ref[...].astype(compute_dtype)           # (D1, Ep)
    u = u_ref[...].astype(compute_dtype)           # (Ep, Ep)

    # 1) incidence_matrix = H @ W. Fold batches into the MXU M dimension.
    im = jnp.dot(h.reshape(bt * n, d1), w,
                 preferred_element_type=jnp.float32).reshape(bt, n, ep)
    im_c = im.astype(compute_dtype)

    # 2) G = im^T @ H per batch (contract over N). Since
    #    (U @ im^T) @ H == U @ (im^T @ H), this avoids materializing the
    #    (E, N) transpose and the E*E*N contraction of the original form.
    g = jnp.einsum("bne,bnd->bed", im_c, h,
                   preferred_element_type=jnp.float32)            # (Bt, Ep, D1)

    # 3) hyperedge_emb_E = relu(U @ G) + G.  U is broadcast once (hoisted,
    #    single trace) so the contraction is a plain batched matmul with no
    #    output transpose.
    u_b = jnp.broadcast_to(u, (bt, ep, ep))
    ug = jnp.einsum("bef,bfd->bed", u_b, g.astype(compute_dtype),
                    preferred_element_type=jnp.float32)           # (Bt, Ep, D1)
    he = jnp.maximum(ug, 0.0) + g

    # 4) node_emb_F = incidence_matrix @ hyperedge_emb_E
    f = jnp.einsum("bne,bed->bnd", im_c, he.astype(compute_dtype),
                   preferred_element_type=jnp.float32)            # (Bt, N, D1)

    f_ref[...] = f.astype(f_ref.dtype)
    # Store the incidence matrix at its true width (static lane slice); no
    # post-kernel slicing / extra HBM pass needed.
    im_ref[...] = im[..., :e_out].astype(im_ref.dtype)


def _pick_batch_block(B, N, D1, Ep):
    """Largest divisor of B that gives a decent MXU M dim while keeping the
    per-step block footprint small enough for v7x's 64 MiB VMEM."""
    target_rows = 256
    budget_bytes = 8 * 1024 * 1024
    bt = 1
    for cand in range(1, B + 1):
        if B % cand:
            continue
        if 4 * cand * N * (2 * D1 + Ep) > budget_bytes:
            break
        bt = cand
        if cand * N >= target_rows:
            break
    return bt


def hyper_graph_cn(H, W, U, *, compute_dtype=jnp.bfloat16, batch_block=None):
    """H: (B, N, nhid1), W: (nhid1, he_nhid), U: (he_nhid, he_nhid).
    Returns (node_emb_F (B, N, nhid1), incidence_matrix (B, N, he_nhid))."""
    B, N, D1 = H.shape
    E = W.shape[1]
    assert W.shape == (D1, E) and U.shape == (E, E)

    # Zero-pad the hyperedge dim to a lane-dense multiple of 128.  Padded
    # columns of W and rows/cols of U are zero, so all results are exactly
    # those of the unpadded computation.
    Ep = max(128, ((E + 127) // 128) * 128)
    if Ep != E:
        Wp = jnp.zeros((D1, Ep), W.dtype).at[:, :E].set(W)
        Up = jnp.zeros((Ep, Ep), U.dtype).at[:E, :E].set(U)
    else:
        Wp, Up = W, U

    Bt = batch_block if batch_block is not None else _pick_batch_block(B, N, D1, Ep)
    assert B % Bt == 0, "batch_block must divide the batch size"

    # TODO(synk): for very large N the (Bt, N, D1) block should additionally be
    # tiled over N (accumulate G across N-tiles, second pass for F) to fit
    # v7x's 64 MiB VMEM.
    flops = 2 * B * (3 * N * D1 * Ep + Ep * Ep * D1)
    bytes_accessed = 4 * (2 * B * N * D1 + B * N * E + D1 * Ep + Ep * Ep)

    kernel = functools.partial(_hgcn_kernel, compute_dtype=compute_dtype)

    f_out, im_out = pl.pallas_call(
        kernel,
        out_shape=(
            jax.ShapeDtypeStruct((B, N, D1), jnp.float32),
            jax.ShapeDtypeStruct((B, N, E), jnp.float32),
        ),
        grid_spec=pltpu.PrefetchScalarGridSpec(
            num_scalar_prefetch=0,
            grid=(B // Bt,),
            in_specs=[
                pl.BlockSpec((Bt, N, D1), lambda b: (b, 0, 0)),
                pl.BlockSpec((D1, Ep), lambda b: (0, 0)),   # grid-invariant
                pl.BlockSpec((Ep, Ep), lambda b: (0, 0)),   # grid-invariant
            ],
            out_specs=[
                pl.BlockSpec((Bt, N, D1), lambda b: (b, 0, 0)),
                pl.BlockSpec((Bt, N, E), lambda b: (b, 0, 0)),
            ],
        ),
        compiler_params=pltpu.CompilerParams(
            dimension_semantics=("parallel",),
            vmem_limit_bytes=48 * 1024 * 1024,
        ),
        cost_estimate=pl.CostEstimate(
            flops=flops, transcendentals=0, bytes_accessed=bytes_accessed),
    )(H, Wp, Up)

    return f_out, im_out


def _xavier_uniform(key, shape, gain):
    fan_in, fan_out = shape
    bound = gain * math.sqrt(6.0 / (fan_in + fan_out))
    return jax.random.uniform(key, shape, jnp.float32, -bound, bound)


def _reference(H, W, U):
    # Original (PyTorch) formulation, f32.
    im = jnp.einsum("bnd,de->bne", H, W)
    im_t = jnp.swapaxes(im, 1, 2)
    emb = jnp.einsum("ef,bfn->ben", U, im_t)
    he = jnp.maximum(jnp.einsum("ben,bnd->bed", emb, H), 0.0) \
        + jnp.einsum("ben,bnd->bed", im_t, H)
    f = jnp.einsum("bne,bed->bnd", im, he)
    return f, im


def _max_rel_err(a, b):
    return float(jnp.max(jnp.abs(a - b)) / (jnp.max(jnp.abs(b)) + 1e-6))


if __name__ == "__main__":
    B, N, nhid1, he_nhid = 2, 16, 32, 8
    key = jax.random.PRNGKey(0)
    k_h, k_w, k_u = jax.random.split(key, 3)

    H = jax.random.normal(k_h, (B, N, nhid1), jnp.float32)
    W = _xavier_uniform(k_w, (nhid1, he_nhid), math.sqrt(2.0))
    U = _xavier_uniform(k_u, (he_nhid, he_nhid), math.sqrt(2.0))

    f_ref, im_ref = _reference(H, W, U)

    # Strict semantic check: f32 compute path (only FP reassociation differs).
    f32_f, f32_im = hyper_graph_cn(H, W, U, compute_dtype=jnp.float32)
    jax.block_until_ready((f32_f, f32_im))
    assert _max_rel_err(f32_f, f_ref) < 1e-3
    assert _max_rel_err(f32_im, im_ref) < 1e-3

    # Fast path: bf16 MXU operands, f32 accumulation.
    node_emb_F, incidence_matrix = hyper_graph_cn(H, W, U)
    jax.block_until_ready((node_emb_F, incidence_matrix))
    assert node_emb_F.shape == (B, N, nhid1)
    assert incidence_matrix.shape == (B, N, he_nhid)
    assert _max_rel_err(node_emb_F, f_ref) < 5e-2
    assert _max_rel_err(incidence_matrix, im_ref) < 5e-2

    print("KERNEL_OK")
</pallas_src>

<mosaic_0001>
module attributes {stable_mosaic.version = 11 : i64} {
  func.func @_hgcn_kernel(%arg0: i32, %arg1: memref<2x16x32xf32, #tpu.memory_space<vmem>>, %arg2: memref<32x128xf32, #tpu.memory_space<vmem>>, %arg3: memref<128x128xf32, #tpu.memory_space<vmem>>, %arg4: memref<2x16x32xf32, #tpu.memory_space<vmem>>, %arg5: memref<2x16x8xf32, #tpu.memory_space<vmem>>) attributes {dimension_semantics = [#tpu.dimension_semantics<parallel>], iteration_bounds = array<i64: 1>, scalar_prefetch = 0 : i64, scratch_operands = 0 : i64, tpu.core_type = #tpu.core_type<tc>, window_params = [{transform_indices = @transform_0, window_bounds = array<i64: 2, 16, 32>}, {pipeline_mode = #tpu.pipeline_mode<synchronous>, transform_indices = @transform_1, window_bounds = array<i64: 32, 128>}, {pipeline_mode = #tpu.pipeline_mode<synchronous>, transform_indices = @transform_2, window_bounds = array<i64: 128, 128>}, {transform_indices = @transform_3, window_bounds = array<i64: 2, 16, 32>}, {transform_indices = @transform_4, window_bounds = array<i64: 2, 16, 8>}]} {
    %c0 = arith.constant 0 : index
    %c0_0 = arith.constant 0 : index
    %c0_1 = arith.constant 0 : index
    %0 = vector.load %arg1[%c0, %c0_0, %c0_1] : memref<2x16x32xf32, #tpu.memory_space<vmem>>, vector<2x16x32xf32>
    %c0_2 = arith.constant 0 : index
    %c0_3 = arith.constant 0 : index
    %1 = vector.load %arg2[%c0_2, %c0_3] : memref<32x128xf32, #tpu.memory_space<vmem>>, vector<32x128xf32>
    %c0_4 = arith.constant 0 : index
    %c0_5 = arith.constant 0 : index
    %2 = vector.load %arg3[%c0_4, %c0_5] : memref<128x128xf32, #tpu.memory_space<vmem>>, vector<128x128xf32>
    %3 = vector.shape_cast %0 : vector<2x16x32xf32> to vector<32x32xf32>
    %cst = arith.constant dense<0.000000e+00> : vector<32x128xf32>
    %4 = tpu.matmul %3, %1, %cst {dimension_numbers = #tpu.dot_dimension_numbers<[1], [0], [0], [1], [0, 0, 1, 1], [], []>} : vector<32x32xf32>, vector<32x128xf32>, vector<32x128xf32> -> vector<32x128xf32>
    %5 = vector.shape_cast %4 : vector<32x128xf32> to vector<2x16x128xf32>
    "tpu.trace_start"() <{level = 10 : i32, message = "bne,bnd->bed"}> : () -> ()
    %cst_6 = arith.constant dense<0.000000e+00> : vector<2x128x32xf32>
    %6 = tpu.matmul %5, %0, %cst_6 {dimension_numbers = #tpu.dot_dimension_numbers<[1], [1], [2], [2], [0, 0, 0, 2, 1, 2], [0], [0]>} : vector<2x16x128xf32>, vector<2x16x32xf32>, vector<2x128x32xf32> -> vector<2x128x32xf32>
    "tpu.trace_stop"() : () -> ()
    %7 = vector.shape_cast %2 : vector<128x128xf32> to vector<1x128x128xf32>
    %8 = vector.broadcast %7 : vector<1x128x128xf32> to vector<2x128x128xf32>
    "tpu.trace_start"() <{level = 10 : i32, message = "bef,bfd->bed"}> : () -> ()
    %cst_7 = arith.constant dense<0.000000e+00> : vector<2x128x32xf32>
    %9 = tpu.matmul %8, %6, %cst_7 {dimension_numbers = #tpu.dot_dimension_numbers<[2], [1], [1], [2], [0, 0, 0, 1, 1, 2], [0], [0]>} : vector<2x128x128xf32>, vector<2x128x32xf32>, vector<2x128x32xf32> -> vector<2x128x32xf32>
    "tpu.trace_stop"() : () -> ()
    %cst_8 = arith.constant 0.000000e+00 : f32
    %10 = vector.broadcast %cst_8 : f32 to vector<2x128x32xf32>
    %11 = arith.maximumf %9, %10 : vector<2x128x32xf32>
    %12 = arith.addf %11, %6 : vector<2x128x32xf32>
    "tpu.trace_start"() <{level = 10 : i32, message = "bne,bed->bnd"}> : () -> ()
    %cst_9 = arith.constant dense<0.000000e+00> : vector<2x16x32xf32>
    %13 = tpu.matmul %5, %12, %cst_9 {dimension_numbers = #tpu.dot_dimension_numbers<[2], [1], [1], [2], [0, 0, 0, 1, 1, 2], [0], [0]>} : vector<2x16x128xf32>, vector<2x128x32xf32>, vector<2x16x32xf32> -> vector<2x16x32xf32>
    "tpu.trace_stop"() : () -> ()
    %c0_10 = arith.constant 0 : index
    %c0_11 = arith.constant 0 : index
    %c0_12 = arith.constant 0 : index
    %14 = vector.load %arg4[%c0_10, %c0_11, %c0_12] : memref<2x16x32xf32, #tpu.memory_space<vmem>>, vector<2x16x32xf32>
    tpu.vector_store %arg4[%c0_10, %c0_11, %c0_12], %13 {strides = array<i32>} : memref<2x16x32xf32, #tpu.memory_space<vmem>>, vector<2x16x32xf32>,
    %15 = vector.extract_strided_slice %5 {offsets = [0, 0, 0], sizes = [2, 16, 8], strides = [1, 1, 1]} : vector<2x16x128xf32> to vector<2x16x8xf32>
    %c0_13 = arith.constant 0 : index
    %c0_14 = arith.constant 0 : index
    %c0_15 = arith.constant 0 : index
    %16 = vector.load %arg5[%c0_13, %c0_14, %c0_15] : memref<2x16x8xf32, #tpu.memory_space<vmem>>, vector<2x16x8xf32>
    tpu.vector_store %arg5[%c0_13, %c0_14, %c0_15], %15 {strides = array<i32>} : memref<2x16x8xf32, #tpu.memory_space<vmem>>, vector<2x16x8xf32>,
    return
  }
  func.func @transform_0(%arg0: i32) -> (i32, i32, i32) {
    %c0_i32 = arith.constant 0 : i32
    %c0_i32_0 = arith.constant 0 : i32
    %c0_i32_1 = arith.constant 0 : i32
    return %arg0, %c0_i32, %c0_i32_0 : i32, i32, i32
  }
  func.func @transform_1(%arg0: i32) -> (i32, i32) {
    %c0_i32 = arith.constant 0 : i32
    %c0_i32_0 = arith.constant 0 : i32
    %c0_i32_1 = arith.constant 0 : i32
    return %c0_i32, %c0_i32_0 : i32, i32
  }
  func.func @transform_2(%arg0: i32) -> (i32, i32) {
    %c0_i32 = arith.constant 0 : i32
    %c0_i32_0 = arith.constant 0 : i32
    %c0_i32_1 = arith.constant 0 : i32
    return %c0_i32, %c0_i32_0 : i32, i32
  }
  func.func @transform_3(%arg0: i32) -> (i32, i32, i32) {
    %c0_i32 = arith.constant 0 : i32
    %c0_i32_0 = arith.constant 0 : i32
    %c0_i32_1 = arith.constant 0 : i32
    return %arg0, %c0_i32, %c0_i32_0 : i32, i32, i32
  }
  func.func @transform_4(%arg0: i32) -> (i32, i32, i32) {
    %c0_i32 = arith.constant 0 : i32
    %c0_i32_0 = arith.constant 0 : i32
    %c0_i32_1 = arith.constant 0 : i32
    return %arg0, %c0_i32, %c0_i32_0 : i32, i32, i32
  }
}

</mosaic_0001>

<bundles_post_ra>
// kernel: tpu_custom_call.1
= control target key start
LH: loop header
LB: loop body
LE: loop exit
PB: predicated region body
PF: predicated region fallthrough
CT: control target
= control target key end

     0   :  { %10 = vsyncpa [#allocation3], 0  ;;  %s1148_s0 = inlined_call_operand.hbm [shape: f32[2,16,32], index: 0, kind: input, shape index: {}]   ;;  %s1149_s1 = inlined_call_operand.hbm [shape: f32[32,128], index: 1, kind: input, shape index: {}]   ;;  %s1150_s2 = inlined_call_operand.hbm [shape: f32[128,128], index: 2, kind: input, shape index: {}]   ;;  %s1151_s3 = inlined_call_operand.hbm [shape: f32[2,16,32], index: 3, kind: output, shape index: {0}]   ;;  %s1152_s4 = inlined_call_operand.vmem [shape: f32[2,16,8], index: 4, kind: output, shape index: {1}]  }
   0x1   :  { %11 = vsyncpa [#allocation6], 0 }
   0x2   :  { %12 = vsyncpa [#allocation4], 0  ;;  %s30_s17 = sshll.u32 %s1149_s1, 4  ;;  %s839_s18 = smov [#allocation5]   ;;  %s31_s17 = int_to_ptr.hbm [resolvable:$true] %s30_s17 }
   0x3   :  { %s32_s19 = sshll.u32 %s839_s18, 4  ;;  %s17_s22 = sshll.u32 %s1148_s0, 4  ;;  %s33_s19 = int_to_ptr.vmem [resolvable:$true] %s32_s19  ;;  %s18_s22 = int_to_ptr.hbm [resolvable:$true] %s17_s22 }
   0x4   :  { %s840_s23 = smov 128   ;;  %s841_s24 = smov 8  }
   0x5   :  { %38 = dma.hbm_to_vmem [thread:$0]  %s31_s17, 512, %s33_s19, [#allocation6], %s840_s23, %s840_s23, %s841_s24  }
   0x6   :  { %s842_s25 = smov [#allocation2]   ;;  %s43_s1 = sshll.u32 %s1150_s2, 4  ;;  %s44_s1 = int_to_ptr.hbm [resolvable:$true] %s43_s1 }
   0x7   :  { %s19_s26 = sshll.u32 %s842_s25, 4  ;;  %s843_s0 = smov [#allocation7]   ;;  %s20_s26 = int_to_ptr.vmem [resolvable:$true] %s19_s26 }
   0x8   :  { %25 = dma.hbm_to_vmem [thread:$0]  %s18_s22, 512, %s20_s26, [#allocation3], %s840_s23, %s840_s23, %s841_s24  }
   0x9   :  { %s45_s29 = sshll.u32 %s843_s0, 4  ;;  %s46_s29 = int_to_ptr.vmem [resolvable:$true] %s45_s29 }
   0xa   :  { %51 = dma.hbm_to_vmem [thread:$0]  %s44_s1, 2048, %s46_s29, [#allocation6], %s840_s23, %s840_s23, %s841_s24  }
   0xb   :  { %833 = dma.done.wait [#allocation3], 512  }
   0xc   :  { %834 = vsyncadd [#allocation3], 4294966784 }
   0xd   :  { %835 = dma.done.wait [#allocation6], 2560  }
   0xe   :  { %836 = vsyncadd [#allocation6], 4294964736  ;;  %v71_v0 = vld [vmem:[#allocation5 + $0x18] sm:$0xff]  ;;  %v70_v1 = vld [vmem:[#allocation5 + $0x10] sm:$0xff]  ;;  %vm88_vm0 = vcmask 261120   ;;  %vm665_vm1 = vcmask 64512  }
   0xf   :  { %113 = vmatpush.msra.mxu0 %v71_v0  ;;  %v65_v2 = vld [vmem:[#allocation2 + $0x8] sm:$0xff]  ;;  %v67_v4 = vld [vmem:[#allocation2 + $0x18] sm:$0xff]  ;;  %v64_v5 = vld [vmem:[#allocation2] sm:$0xff]  ;;  %vm162_vm2 = vcmask 130048   ;;  %s676_s14 = sshll.u32 %s1151_s3, 4  ;;  %s677_s14 = int_to_ptr.hbm [resolvable:$true] %s676_s14 }
  0x10   :  { %v69_v3 = vld [vmem:[#allocation5 + $0x8] sm:$0xff]  ;;  %225 = vmatpush.msra.mxu1 %v65_v2  ;;  %370 = vmatpush.msra.mxu2 %v67_v4  ;;  %v68_v6 = vld [vmem:[#allocation5] sm:$0xff]  ;;  %v66_v7 = vld [vmem:[#allocation2 + $0x10] sm:$0xff] }
  0x11   :  { %114 = vmatpush.msra.mxu0 %v70_v1 }
  0x12   :  { %226 = vmatpush.msra.mxu1 %v64_v5  ;;  %371 = vmatpush.msra.mxu2 %v66_v7 }
  0x13   :  { %115 = vmatpush.msra.mxu0 %v69_v3 }
  0x15   :  { %116 = vmatpush.msra.mxu0 %v68_v6 }
  0x16   :  { %694 = vmatmul.msk.f32.vlgmr.msra.gmra.mxu0 %vm88_vm0, %v64_v5 }
  0x1e   :  { %695 = vmatmul.msk.f32.gmra.mxu0 %vm88_vm0, %v65_v2 }
  0x26   :  { %696 = vmatmul.msk.f32.gmra.mxu0 %vm88_vm0, %v66_v7 }
  0x2e   :  { %697 = vmatmul.msk.f32.gmra.mxu0 %vm88_vm0, %v67_v4 }
  0x93   :  { %v892_v8 = vpop.f32.mrf.mxu0 }
  0x94   :  { %666 = vst.msk [vmem:[%s1152_s4] sm:$0xff] %vm665_vm1, %v892_v8  ;;  %130 = vxpose.xlu1.b32.start [1/2] (short) %v892_v8, 128 }
  0x9b   :  { %v899_v9 = vpop.f32.mrf.mxu0 }
  0x9c   :  { %1163 = vst [vmem:[#allocation12_spill] sm:$0xff] %v899_v9  ;;  %131 = vxpose.xlu1.b32.end [2/2] (short) %v899_v9, 128 }
  0x9d   :  { %667 = vst.msk [vmem:[%s1152_s4 + $0x8] sm:$0xff] %vm665_vm1, %v899_v9 }
  0xa3   :  { %v906_v10 = vpop.f32.mrf.mxu0 }
  0xa4   :  { %1164 = vst [vmem:[#allocation13_spill] sm:$0xff] %v906_v10  ;;  %276 = vxpose.xlu0.b32.start [1/2] (short) %v906_v10, 128 }
  0xa5   :  { %668 = vst.msk [vmem:[%s1152_s4 + $0x10] sm:$0xff] %vm665_vm1, %v906_v10 }
  0xab   :  { %v913_v11 = vpop.f32.mrf.mxu0 }
  0xac   :  { %1165 = vst [vmem:[#allocation14_spill] sm:$0xff] %v913_v11  ;;  %277 = vxpose.xlu0.b32.end [2/2] (short) %v913_v11, 128 }
  0xad   :  { %669 = vst.msk [vmem:[%s1152_s4 + $0x18] sm:$0xff] %vm665_vm1, %v913_v11  ;;  %s844_s4 = smov [#allocation8]  }
  0xae   :  { %s674_s11 = sshll.u32 %s844_s4, 4  ;;  %s675_s11 = int_to_ptr.vmem [resolvable:$true] %s674_s11 }
 0x138   :  { %v146_v12 = vpop.trf.xlu1 }
 0x139   :  { %698 = vmatmul.msk.f32.vlgmr.msra.gmra.mxu1 %vm162_vm2, %v146_v12 }
 0x140   :  { %v147_v13 = vpop.trf.xlu1 }
 0x141   :  { %699 = vmatmul.msk.f32.gmra.mxu1 %vm162_vm2, %v147_v13 }
 0x148   :  { %v148_v14 = vpop.trf.xlu1  ;;  %v292_v15 = vpop.trf.xlu0 }
 0x149   :  { %700 = vmatmul.msk.f32.gmra.mxu1 %vm162_vm2, %v148_v14  ;;  %714 = vmatmul.msk.f32.vlgmr.msra.gmra.mxu2 %vm162_vm2, %v292_v15 }
 0x150   :  { %v149_v16 = vpop.trf.xlu1  ;;  %v293_v17 = vpop.trf.xlu0 }
 0x151   :  { %701 = vmatmul.msk.f32.gmra.mxu1 %vm162_vm2, %v149_v16  ;;  %715 = vmatmul.msk.f32.gmra.mxu2 %vm162_vm2, %v293_v17  ;;  %v72_v16 = vld [vmem:[#allocation7] sm:$0xff]  ;;  %v73_v17 = vld [vmem:[#allocation7 + $0x8] sm:$0xff] }
 0x158   :  { %v150_v18 = vpop.trf.xlu1  ;;  %v294_v19 = vpop.trf.xlu0 }
 0x159   :  { %702 = vmatmul.msk.f32.gmra.mxu1 %vm162_vm2, %v150_v18  ;;  %716 = vmatmul.msk.f32.gmra.mxu2 %vm162_vm2, %v294_v19  ;;  %v74_v18 = vld [vmem:[#allocation7 + $0x10] sm:$0xff]  ;;  %v75_v19 = vld [vmem:[#allocation7 + $0x18] sm:$0xff] }
 0x160   :  { %v151_v20 = vpop.trf.xlu1  ;;  %v295_v21 = vpop.trf.xlu0 }
 0x161   :  { %703 = vmatmul.msk.f32.gmra.mxu1 %vm162_vm2, %v151_v20  ;;  %717 = vmatmul.msk.f32.gmra.mxu2 %vm162_vm2, %v295_v21  ;;  %v76_v20 = vld [vmem:[#allocation7 + $0x20] sm:$0xff]  ;;  %v77_v21 = vld [vmem:[#allocation7 + $0x28] sm:$0xff] }
 0x168   :  { %v152_v22 = vpop.trf.xlu1  ;;  %v296_v23 = vpop.trf.xlu0 }
 0x169   :  { %704 = vmatmul.msk.f32.gmra.mxu1 %vm162_vm2, %v152_v22  ;;  %718 = vmatmul.msk.f32.gmra.mxu2 %vm162_vm2, %v296_v23  ;;  %v78_v22 = vld [vmem:[#allocation7 + $0x30] sm:$0xff]  ;;  %v79_v23 = vld [vmem:[#allocation7 + $0x38] sm:$0xff] }
 0x170   :  { %v153_v24 = vpop.trf.xlu1  ;;  %v297_v25 = vpop.trf.xlu0 }
 0x171   :  { %705 = vmatmul.msk.f32.gmra.mxu1 %vm162_vm2, %v153_v24  ;;  %719 = vmatmul.msk.f32.gmra.mxu2 %vm162_vm2, %v297_v25  ;;  %v80_v24 = vld [vmem:[#allocation7 + $0x40] sm:$0xff]  ;;  %v81_v25 = vld [vmem:[#allocation7 + $0x48] sm:$0xff] }
 0x178   :  { %v154_v26 = vpop.trf.xlu1  ;;  %v298_v27 = vpop.trf.xlu0 }
 0x179   :  { %706 = vmatmul.msk.f32.gmra.mxu1 %vm162_vm2, %v154_v26  ;;  %720 = vmatmul.msk.f32.gmra.mxu2 %vm162_vm2, %v298_v27  ;;  %v82_v26 = vld [vmem:[#allocation7 + $0x50] sm:$0xff]  ;;  %v83_v27 = vld [vmem:[#allocation7 + $0x58] sm:$0xff] }
 0x180   :  { %v155_v28 = vpop.trf.xlu1  ;;  %v299_v29 = vpop.trf.xlu0 }
 0x181   :  { %707 = vmatmul.msk.f32.gmra.mxu1 %vm162_vm2, %v155_v28  ;;  %721 = vmatmul.msk.f32.gmra.mxu2 %vm162_vm2, %v299_v29  ;;  %v84_v28 = vld [vmem:[#allocation7 + $0x60] sm:$0xff]  ;;  %v85_v29 = vld [vmem:[#allocation7 + $0x68] sm:$0xff] }
 0x188   :  { %v156_v30 = vpop.trf.xlu1  ;;  %v300_v31 = vpop.trf.xlu0 }
 0x189   :  { %708 = vmatmul.msk.f32.gmra.mxu1 %vm162_vm2, %v156_v30  ;;  %722 = vmatmul.msk.f32.gmra.mxu2 %vm162_vm2, %v300_v31  ;;  %v86_v30 = vld [vmem:[#allocation7 + $0x70] sm:$0xff]  ;;  %v87_v31 = vld [vmem:[#allocation7 + $0x78] sm:$0xff] }
 0x190   :  { %v157_v32 = vpop.trf.xlu1  ;;  %v301_v33 = vpop.trf.xlu0 }
 0x191   :  { %709 = vmatmul.msk.f32.gmra.mxu1 %vm162_vm2, %v157_v32  ;;  %723 = vmatmul.msk.f32.gmra.mxu2 %vm162_vm2, %v301_v33 }
 0x198   :  { %v158_v34 = vpop.trf.xlu1  ;;  %v302_v35 = vpop.trf.xlu0 }
 0x199   :  { %710 = vmatmul.msk.f32.gmra.mxu1 %vm162_vm2, %v158_v34  ;;  %724 = vmatmul.msk.f32.gmra.mxu2 %vm162_vm2, %v302_v35 }
 0x1a0   :  { %v159_v36 = vpop.trf.xlu1  ;;  %v303_v37 = vpop.trf.xlu0 }
 0x1a1   :  { %711 = vmatmul.msk.f32.gmra.mxu1 %vm162_vm2, %v159_v36  ;;  %725 = vmatmul.msk.f32.gmra.mxu2 %vm162_vm2, %v303_v37 }
 0x1a8   :  { %v160_v38 = vpop.trf.xlu1  ;;  %v304_v39 = vpop.trf.xlu0 }
 0x1a9   :  { %712 = vmatmul.msk.f32.gmra.mxu1 %vm162_vm2, %v160_v38  ;;  %726 = vmatmul.msk.f32.gmra.mxu2 %vm162_vm2, %v304_v39 }
 0x1b0   :  { %v161_v40 = vpop.trf.xlu1  ;;  %v305_v41 = vpop.trf.xlu0 }
 0x1b1   :  { %713 = vmatmul.msk.f32.gmra.mxu1 %vm162_vm2, %v161_v40  ;;  %727 = vmatmul.msk.f32.gmra.mxu2 %vm162_vm2, %v305_v41 }
 0x1b6   :  { %v950_v42 = vpop.f32.mrf.mxu1 }
 0x1b8   :  { %v306_v43 = vpop.trf.xlu0 }
 0x1b9   :  { %728 = vmatmul.msk.f32.gmra.mxu2 %vm162_vm2, %v306_v43 }
 0x1be   :  { %v953_v44 = vpop.f32.mrf.mxu1 }
 0x1c0   :  { %v307_v45 = vpop.trf.xlu0 }
 0x1c1   :  { %729 = vmatmul.msk.f32.gmra.mxu2 %vm162_vm2, %v307_v45 }
 0x1c6   :  { %v956_v46 = vpop.f32.mrf.mxu1 }
 0x1cc   :  { %v958_v47 = vpop.f32.mrf.mxu2 }
 0x1cd   :  { %1166 = vst [vmem:[#allocation15_spill] sm:$0xff] %v958_v47 }
 0x1ce   :  { %v960_v48 = vpop.f32.mrf.mxu1 }
 0x1d4   :  { %v962_v49 = vpop.f32.mrf.mxu2 }
 0x1d5   :  { %1167 = vst [vmem:[#allocation16_spill] sm:$0xff] %v962_v49 }
 0x1d6   :  { %v964_v50 = vpop.f32.mrf.mxu1 }
 0x1dc   :  { %v966_v51 = vpop.f32.mrf.mxu2 }
 0x1dd   :  { %1168 = vst [vmem:[#allocation17_spill] sm:$0xff] %v966_v51 }
 0x1de   :  { %v968_v52 = vpop.f32.mrf.mxu1 }
 0x1e4   :  { %v970_v53 = vpop.f32.mrf.mxu2 }
 0x1e5   :  { %1169 = vst [vmem:[#allocation18_spill] sm:$0xff] %v970_v53 }
 0x1e6   :  { %v972_v54 = vpop.f32.mrf.mxu1 }
 0x1ec   :  { %v974_v55 = vpop.f32.mrf.mxu2 }
 0x1ed   :  { %1170 = vst [vmem:[#allocation19_spill] sm:$0xff] %v974_v55 }
 0x1ee   :  { %v976_v56 = vpop.f32.mrf.mxu1 }
 0x1f4   :  { %v978_v57 = vpop.f32.mrf.mxu2 }
 0x1f5   :  { %1171 = vst [vmem:[#allocation20_spill] sm:$0xff] %v978_v57 }
 0x1f6   :  { %v980_v58 = vpop.f32.mrf.mxu1 }
 0x1fc   :  { %v982_v59 = vpop.f32.mrf.mxu2 }
 0x1fd   :  { %1172 = vst [vmem:[#allocation21_spill] sm:$0xff] %v982_v59 }
 0x1fe   :  { %v984_v60 = vpop.f32.mrf.mxu1 }
 0x204   :  { %v986_v61 = vpop.f32.mrf.mxu2 }
 0x206   :  { %v988_v62 = vpop.f32.mrf.mxu1 }
 0x20c   :  { %v990_v63 = vpop.f32.mrf.mxu2 }
 0x20e   :  { %v992_v0 = vpop.f32.mrf.mxu1 }
 0x214   :  { %v994_v1 = vpop.f32.mrf.mxu2 }
 0x216   :  { %v996_v2 = vpop.f32.mrf.mxu1 }
 0x21c   :  { %v998_v3 = vpop.f32.mrf.mxu2 }
 0x21e   :  { %v1000_v4 = vpop.f32.mrf.mxu1 }
 0x224   :  { %v1002_v5 = vpop.f32.mrf.mxu2 }
 0x226   :  { %v1004_v6 = vpop.f32.mrf.mxu1 }
 0x22c   :  { %v1006_v7 = vpop.f32.mrf.mxu2 }
 0x22e   :  { %v1008_v12 = vpop.f32.mrf.mxu1 }
 0x22f   :  { %421 = vmatpush.msra.mxu3 %v1008_v12 }
 0x231   :  { %422 = vmatpush.msra.mxu3 %v1004_v6 }
 0x233   :  { %423 = vmatpush.msra.mxu3 %v1000_v4 }
 0x234   :  { %v1013_v13 = vpop.f32.mrf.mxu2 }
 0x235   :  { %424 = vmatpush.msra.mxu3 %v996_v2 }
 0x237   :  { %425 = vmatpush.msra.mxu3 %v992_v0 }
 0x239   :  { %426 = vmatpush.msra.mxu3 %v988_v62 }
 0x23b   :  { %427 = vmatpush.msra.mxu3 %v984_v60 }
 0x23c   :  { %v1019_v14 = vpop.f32.mrf.mxu2 }
 0x23d   :  { %428 = vmatpush.msra.mxu3 %v980_v58 }
 0x23f   :  { %429 = vmatpush.msra.mxu3 %v976_v56 }
 0x241   :  { %430 = vmatpush.msra.mxu3 %v972_v54 }
 0x243   :  { %431 = vmatpush.msra.mxu3 %v968_v52 }
 0x244   :  { %v1025_v15 = vpop.f32.mrf.mxu2 }
 0x245   :  { %432 = vmatpush.msra.mxu3 %v964_v50  ;;  %486 = vmatpush.msrb.mxu0 %v1025_v15 }
 0x247   :  { %433 = vmatpush.msra.mxu3 %v960_v48  ;;  %487 = vmatpush.msrb.mxu0 %v1019_v14 }
 0x249   :  { %434 = vmatpush.msra.mxu3 %v956_v46  ;;  %488 = vmatpush.msrb.mxu0 %v1013_v13 }
 0x24b   :  { %435 = vmatpush.msra.mxu3 %v953_v44  ;;  %489 = vmatpush.msrb.mxu0 %v1006_v7 }
 0x24d   :  { %436 = vmatpush.msra.mxu3 %v950_v42  ;;  %490 = vmatpush.msrb.mxu0 %v1002_v5 }
 0x24e   :  { %437 = vmatmul.f32.vlgmr.msra.gmra.mxu3 %v72_v16 }
 0x24f   :  { %491 = vmatpush.msrb.mxu0 %v998_v3 }
 0x251   :  { %492 = vmatpush.msrb.mxu0 %v994_v1 }
 0x253   :  { %493 = vmatpush.msrb.mxu0 %v990_v63 }
 0x255   :  { %494 = vmatpush.msrb.mxu0 %v986_v61 }
 0x256   :  { %440 = vmatmul.f32.gmra.mxu3 %v73_v17 }
 0x257   :  { %495 = vmatpush.msrb.mxu0 %v982_v59 }
 0x259   :  { %496 = vmatpush.msrb.mxu0 %v978_v57 }
 0x25b   :  { %497 = vmatpush.msrb.mxu0 %v974_v55 }
 0x25d   :  { %498 = vmatpush.msrb.mxu0 %v970_v53 }
 0x25e   :  { %443 = vmatmul.f32.gmra.mxu3 %v74_v18 }
 0x25f   :  { %499 = vmatpush.msrb.mxu0 %v966_v51 }
 0x261   :  { %500 = vmatpush.msrb.mxu0 %v962_v49 }
 0x263   :  { %501 = vmatpush.msrb.mxu0 %v958_v47 }
 0x264   :  { %502 = vmatmul.f32.vlgmr.msrb.gmra.mxu0 %v72_v16 }
 0x266   :  { %446 = vmatmul.f32.gmra.mxu3 %v75_v19 }
 0x26c   :  { %505 = vmatmul.f32.gmra.mxu0 %v73_v17 }
 0x26e   :  { %449 = vmatmul.f32.gmra.mxu3 %v76_v20 }
 0x274   :  { %508 = vmatmul.f32.gmra.mxu0 %v74_v18 }
 0x276   :  { %452 = vmatmul.f32.gmra.mxu3 %v77_v21 }
 0x27c   :  { %511 = vmatmul.f32.gmra.mxu0 %v75_v19 }
 0x27e   :  { %455 = vmatmul.f32.gmra.mxu3 %v78_v22 }
 0x284   :  { %514 = vmatmul.f32.gmra.mxu0 %v76_v20 }
 0x286   :  { %458 = vmatmul.f32.gmra.mxu3 %v79_v23 }
 0x28c   :  { %517 = vmatmul.f32.gmra.mxu0 %v77_v21 }
 0x28e   :  { %461 = vmatmul.f32.gmra.mxu3 %v80_v24 }
 0x294   :  { %520 = vmatmul.f32.gmra.mxu0 %v78_v22 }
 0x296   :  { %464 = vmatmul.f32.gmra.mxu3 %v81_v25 }
 0x29c   :  { %523 = vmatmul.f32.gmra.mxu0 %v79_v23 }
 0x29e   :  { %467 = vmatmul.f32.gmra.mxu3 %v82_v26 }
 0x2a4   :  { %526 = vmatmul.f32.gmra.mxu0 %v80_v24 }
 0x2a6   :  { %470 = vmatmul.f32.gmra.mxu3 %v83_v27 }
 0x2ac   :  { %529 = vmatmul.f32.gmra.mxu0 %v81_v25 }
 0x2ae   :  { %473 = vmatmul.f32.gmra.mxu3 %v84_v28 }
 0x2b4   :  { %532 = vmatmul.f32.gmra.mxu0 %v82_v26 }
 0x2b6   :  { %476 = vmatmul.f32.gmra.mxu3 %v85_v29 }
 0x2bc   :  { %535 = vmatmul.f32.gmra.mxu0 %v83_v27 }
 0x2be   :  { %479 = vmatmul.f32.gmra.mxu3 %v86_v30 }
 0x2c4   :  { %538 = vmatmul.f32.gmra.mxu0 %v84_v28 }
 0x2c6   :  { %482 = vmatmul.f32.gmra.mxu3 %v87_v31 }
 0x2cc   :  { %541 = vmatmul.f32.gmra.mxu0 %v85_v29 }
 0x2d1   :  { %v1048_v32 = vpop.f32.mrf.mxu3 }
 0x2d4   :  { %544 = vmatmul.f32.gmra.mxu0 %v86_v30 }
 0x2d9   :  { %v1050_v33 = vpop.f32.mrf.mxu3 }
 0x2dc   :  { %547 = vmatmul.f32.gmra.mxu0 %v87_v31 }
 0x2e1   :  { %v1052_v34 = vpop.f32.mrf.mxu3  ;;  %v1054_v35 = vpop.f32.mrf.mxu0 }
 0x2e2   :  { %1173 = vst [vmem:[#allocation22_spill] sm:$0xff] %v1054_v35 }
 0x2e9   :  { %v1056_v36 = vpop.f32.mrf.mxu3  ;;  %v1058_v37 = vpop.f32.mrf.mxu0 }
 0x2ea   :  { %1174 = vst [vmem:[#allocation23_spill] sm:$0xff] %v1058_v37 }
 0x2f1   :  { %v1060_v38 = vpop.f32.mrf.mxu3  ;;  %v1062_v39 = vpop.f32.mrf.mxu0 }
 0x2f2   :  { %1175 = vst [vmem:[#allocation24_spill] sm:$0xff] %v1062_v39 }
 0x2f9   :  { %v1064_v40 = vpop.f32.mrf.mxu3  ;;  %v1066_v41 = vpop.f32.mrf.mxu0 }
 0x2fa   :  { %1176 = vst [vmem:[#allocation25_spill] sm:$0xff] %v1066_v41 }
 0x301   :  { %v456_v43 = vpop.f32.mrf.mxu3  ;;  %v1068_v45 = vpop.f32.mrf.mxu0 }
 0x309   :  { %v459_v16 = vpop.f32.mrf.mxu3  ;;  %v1070_v17 = vpop.f32.mrf.mxu0 }
 0x311   :  { %v462_v18 = vpop.f32.mrf.mxu3  ;;  %v1072_v19 = vpop.f32.mrf.mxu0 }
 0x319   :  { %v465_v20 = vpop.f32.mrf.mxu3  ;;  %v1074_v21 = vpop.f32.mrf.mxu0 }
 0x31a   :  { %v560_v59 = vmax.f32 %v465_v20, 0.0  ;;  %v1179_v20 = vld [vmem:[#allocation20_spill] sm:$0xff] }
 0x321   :  { %v468_v22 = vpop.f32.mrf.mxu3  ;;  %v1076_v23 = vpop.f32.mrf.mxu0 }
 0x322   :  { %v561_v57 = vmax.f32 %v468_v22, 0.0 }
 0x329   :  { %v471_v24 = vpop.f32.mrf.mxu3  ;;  %v1078_v25 = vpop.f32.mrf.mxu0 }
 0x32a   :  { %v562_v37 = vmax.f32 %v471_v24, 0.0 }
 0x331   :  { %v474_v26 = vpop.f32.mrf.mxu3  ;;  %v1080_v27 = vpop.f32.mrf.mxu0 }
 0x332   :  { %v563_v9 = vmax.f32 %v474_v26, 0.0 }
 0x334   :  { %v595_v41 = vadd.f32 %v563_v9, %v996_v2  ;;  %v556_v9 = vmax.f32 %v1064_v40, 0.0  ;;  %v575_v40 = vmax.f32 %v1076_v23, 0.0  ;;  %v1182_v23 = vld [vmem:[#allocation23_spill] sm:$0xff] }
 0x335   :  { %v568_v24 = vmax.f32 %v1182_v23, 0.0 }
 0x339   :  { %v477_v28 = vpop.f32.mrf.mxu3  ;;  %v1082_v29 = vpop.f32.mrf.mxu0 }
 0x33a   :  { %v564_v51 = vmax.f32 %v477_v28, 0.0  ;;  %v559_v28 = vmax.f32 %v462_v18, 0.0  ;;  %v1178_v18 = vld [vmem:[#allocation25_spill] sm:$0xff] }
 0x33c   :  { %v596_v55 = vadd.f32 %v564_v51, %v1000_v4 }
 0x341   :  { %v480_v30 = vpop.f32.mrf.mxu3  ;;  %v539_v31 = vpop.f32.mrf.mxu0 }
 0x342   :  { %v565_v47 = vmax.f32 %v480_v30, 0.0  ;;  %v1187_v30 = vld [vmem:[#allocation16_spill] sm:$0xff] }
 0x344   :  { %v597_v53 = vadd.f32 %v565_v47, %v1004_v6  ;;  %v592_v47 = vadd.f32 %v560_v59, %v984_v60  ;;  %v557_v6 = vmax.f32 %v456_v43, 0.0  ;;  %v607_v43 = vadd.f32 %v575_v40, %v990_v63 }
 0x346   :  { %v589_v59 = vadd.f32 %v557_v6, %v972_v54 }
 0x349   :  { %v483_v11 = vpop.f32.mrf.mxu3  ;;  %v542_v10 = vpop.f32.mrf.mxu0 }
 0x34a   :  { %v566_v49 = vmax.f32 %v483_v11, 0.0  ;;  %v594_v11 = vadd.f32 %v562_v37, %v992_v0  ;;  %v580_v2 = vmax.f32 %v542_v10, 0.0  ;;  %v554_v37 = vmax.f32 %v1056_v36, 0.0 }
 0x34b   :  { %v588_v10 = vadd.f32 %v556_v9, %v968_v52  ;;  %v552_v36 = vmax.f32 %v1050_v33, 0.0  ;;  %v574_v33 = vmax.f32 %v1074_v21, 0.0  ;;  %v1180_v21 = vld [vmem:[#allocation24_spill] sm:$0xff] }
 0x34c   :  { %v598_v35 = vadd.f32 %v566_v49, %v1008_v12  ;;  %v593_v49 = vadd.f32 %v561_v57, %v988_v62  ;;  %v558_v12 = vmax.f32 %v459_v16, 0.0  ;;  %v555_v57 = vmax.f32 %v1060_v38, 0.0 }
 0x34d   :  { %v579_v62 = vmax.f32 %v539_v31, 0.0  ;;  %v577_v38 = vmax.f32 %v1080_v27, 0.0  ;;  %v586_v52 = vadd.f32 %v554_v37, %v960_v48  ;;  %v569_v63 = vmax.f32 %v1180_v21, 0.0  ;;  %v1186_v27 = vld [vmem:[#allocation17_spill] sm:$0xff] }
 0x34e   :  { %615 = vmatpush.msrb.mxu1 %v598_v35  ;;  %v590_v0 = vadd.f32 %v558_v12, %v976_v56  ;;  %v612_v56 = vadd.f32 %v580_v2, %v1013_v13  ;;  %v587_v54 = vadd.f32 %v555_v57, %v964_v50  ;;  %v600_v31 = vadd.f32 %v568_v24, %v1187_v30  ;;  %v1190_v12 = vld [vmem:[#allocation14_spill] sm:$0xff] }
 0x350   :  { %616 = vmatpush.msrb.mxu1 %v597_v53 }
 0x351   :  { %v545_v39 = vpop.f32.mrf.mxu0 }
 0x352   :  { %617 = vmatpush.msrb.mxu1 %v596_v55  ;;  %v581_v51 = vmax.f32 %v545_v39, 0.0  ;;  %v591_v55 = vadd.f32 %v559_v28, %v980_v58  ;;  %v578_v58 = vmax.f32 %v1082_v29, 0.0  ;;  %v576_v39 = vmax.f32 %v1078_v25, 0.0  ;;  %v1184_v25 = vld [vmem:[#allocation12_spill] sm:$0xff] }
 0x353   :  { %v601_v29 = vadd.f32 %v569_v63, %v1186_v27 }
 0x354   :  { %618 = vmatpush.msrb.mxu1 %v595_v41  ;;  %v613_v60 = vadd.f32 %v581_v51, %v1019_v14  ;;  %v611_v14 = vadd.f32 %v579_v62, %v1006_v7  ;;  %v610_v13 = vadd.f32 %v578_v58, %v1002_v5  ;;  %v609_v7 = vadd.f32 %v577_v38, %v998_v3 }
 0x355   :  { %v584_v41 = vadd.f32 %v552_v36, %v953_v44  ;;  %v608_v48 = vadd.f32 %v576_v39, %v994_v1  ;;  %v573_v5 = vmax.f32 %v1072_v19, 0.0  ;;  %v606_v3 = vadd.f32 %v574_v33, %v986_v61  ;;  %v1177_v1 = vld [vmem:[#allocation21_spill] sm:$0xff]  ;;  %v1183_v61 = vld [vmem:[#allocation18_spill] sm:$0xff] }
 0x356   :  { %619 = vmatpush.msrb.mxu1 %v594_v11  ;;  %v571_v44 = vmax.f32 %v1068_v45, 0.0  ;;  %v570_v19 = vmax.f32 %v1178_v18, 0.0  ;;  %v1185_v45 = vld [vmem:[#allocation22_spill] sm:$0xff]  ;;  %v1188_v11 = vld [vmem:[#allocation15_spill] sm:$0xff] }
 0x357   :  { %v605_v16 = vadd.f32 %v573_v5, %v1177_v1  ;;  %v567_v26 = vmax.f32 %v1185_v45, 0.0 }
 0x358   :  { %620 = vmatpush.msrb.mxu1 %v593_v49  ;;  %v1189_v49 = vld [vmem:[#allocation13_spill] sm:$0xff] }
 0x359   :  { %v548_v53 = vpop.f32.mrf.mxu0  ;;  %v599_v28 = vadd.f32 %v567_v26, %v1188_v11 }
 0x35a   :  { %v582_v4 = vmax.f32 %v548_v53, 0.0  ;;  %621 = vmatpush.msrb.mxu1 %v592_v47 }
 0x35c   :  { %622 = vmatpush.msrb.mxu1 %v591_v55  ;;  %v614_v35 = vadd.f32 %v582_v4, %v1025_v15  ;;  %v553_v15 = vmax.f32 %v1052_v34, 0.0  ;;  %v551_v34 = vmax.f32 %v1048_v32, 0.0 }
 0x35e   :  { %623 = vmatpush.msrb.mxu1 %v590_v0  ;;  %638 = vmatpush.msrb.mxu2 %v614_v35  ;;  %v585_v50 = vadd.f32 %v553_v15, %v956_v46  ;;  %v583_v32 = vadd.f32 %v551_v34, %v950_v42  ;;  %v572_v46 = vmax.f32 %v1070_v17, 0.0  ;;  %v1181_v17 = vld [vmem:[#allocation19_spill] sm:$0xff] }
 0x35f   :  { %v603_v22 = vadd.f32 %v571_v44, %v1181_v17 }
 0x360   :  { %624 = vmatpush.msrb.mxu1 %v589_v59  ;;  %639 = vmatpush.msrb.mxu2 %v613_v60  ;;  %v604_v42 = vadd.f32 %v572_v46, %v1179_v20 }
 0x362   :  { %625 = vmatpush.msrb.mxu1 %v588_v10  ;;  %640 = vmatpush.msrb.mxu2 %v612_v56 }
 0x364   :  { %626 = vmatpush.msrb.mxu1 %v587_v54  ;;  %641 = vmatpush.msrb.mxu2 %v611_v14 }
 0x366   :  { %627 = vmatpush.msrb.mxu1 %v586_v52  ;;  %642 = vmatpush.msrb.mxu2 %v610_v13 }
 0x368   :  { %628 = vmatpush.msrb.mxu1 %v585_v50  ;;  %643 = vmatpush.msrb.mxu2 %v609_v7 }
 0x36a   :  { %629 = vmatpush.msrb.mxu1 %v584_v41  ;;  %644 = vmatpush.msrb.mxu2 %v608_v48 }
 0x36c   :  { %630 = vmatpush.msrb.mxu1 %v583_v32  ;;  %645 = vmatpush.msrb.mxu2 %v607_v43 }
 0x36d   :  { %631 = vmatmul.f32.vlgmr.msrb.gmra.mxu1 %v892_v8  ;;  %v602_v8 = vadd.f32 %v570_v19, %v1183_v61 }
 0x36e   :  { %646 = vmatpush.msrb.mxu2 %v606_v3 }
 0x370   :  { %647 = vmatpush.msrb.mxu2 %v605_v16 }
 0x372   :  { %648 = vmatpush.msrb.mxu2 %v604_v42 }
 0x374   :  { %649 = vmatpush.msrb.mxu2 %v603_v22 }
 0x375   :  { %634 = vmatmul.f32.gmra.mxu1 %v1184_v25 }
 0x376   :  { %650 = vmatpush.msrb.mxu2 %v602_v8 }
 0x378   :  { %651 = vmatpush.msrb.mxu2 %v601_v29 }
 0x37a   :  { %652 = vmatpush.msrb.mxu2 %v600_v31 }
 0x37c   :  { %653 = vmatpush.msrb.mxu2 %v599_v28 }
 0x37d   :  { %654 = vmatmul.f32.vlgmr.msrb.gmra.mxu2 %v1189_v49 }
 0x385   :  { %657 = vmatmul.f32.gmra.mxu2 %v1190_v12 }
 0x3ea   :  { %v632_v47 = vpop.f32.mrf.mxu1 }
 0x3eb   :  { %661 = vst.msk [vmem:[#allocation8] sm:$0xff] %vm88_vm0, %v632_v47 }
 0x3f2   :  { %v635_v53 = vpop.f32.mrf.mxu1 }
 0x3f3   :  { %662 = vst.msk [vmem:[#allocation8 + $0x8] sm:$0xff] %vm88_vm0, %v635_v53 }
 0x400   :  { %v655_v6 = vpop.f32.mrf.mxu2 }
 0x401   :  { %663 = vst.msk [vmem:[#allocation8 + $0x10] sm:$0xff] %vm88_vm0, %v655_v6 }
 0x408   :  { %v658_v51 = vpop.f32.mrf.mxu2 }
 0x409   :  { %664 = vst.msk [vmem:[#allocation8 + $0x18] sm:$0xff] %vm88_vm0, %v658_v51 }
 0x40a   :  { %682 = dma.vmem_to_hbm [thread:$0]  %s675_s11, 512, %s677_s14, [#allocation4], %s840_s23, %s840_s23, %s841_s24  }
 0x40b   :  { %837 = dma.done.wait [#allocation4], 512  }
 0x40c   :  { %838 = vsyncadd [#allocation4], 4294966784 }
 0x40d   :  { %691 = vsyncpa [#allocation3], 1 }
 0x40e   :  { %692 = vsyncpa [#allocation6], 1 }
 0x40f   :  { %693 = vsyncpa [#allocation4], 1 }

</bundles_post_ra>
